<compile_context>
chip_gen: v5e
topology: v5e:2x2
jax: 0.10.0
libtpu: 0.0.40
codegen_flags: <defaults>
</compile_context>

<pallas_src>
import functools
import math

import jax
import jax.numpy as jnp
import numpy as np
from jax.experimental import pallas as pl
from jax.experimental.pallas import tpu as pltpu


# ----------------------------------------------------------------------------
# Pallas kernel: whole layer, whole batch, single invocation.
# ----------------------------------------------------------------------------
def decoder_layer_kernel(
    x_ref,                       # (B, N, E)      VMEM
    wq_ref, wk_ref, wv_ref,      # (H, E, D) each VMEM (head-major)
    wc_ref,                      # (H, D, E)      VMEM (head-major combine)
    bc_ref,                      # (1, E)
    w1_ref, b1_ref,              # (E, F), (1, F)
    w2_ref, b2_ref,              # (F, E), (1, E)
    n1w_ref, n1b_ref,            # (1, E), (1, E)
    n2w_ref, n2b_ref,            # (1, E), (1, E)
    alpha_ref,                   # (2,)           SMEM: [alpha1, alpha2]
    o_ref,                       # (B, N, E)
    *, head_num, qkv_dim):
    B, N, E = x_ref.shape
    x3 = x_ref[...]                          # (B, N, E)
    x2 = x3.reshape(B * N, E)                # (B*N, E) position-wise view

    inv_sqrt_d = jnp.float32(1.0 / math.sqrt(qkv_dim))

    mha = None
    for h in range(head_num):                # static unroll over heads
        # Per-head projections: one (B*N, E) @ (E, D) matmul each; head index
        # is a leading-axis (sublane/batch) index, never a lane slice.
        q2 = jnp.dot(x2, wq_ref[h], preferred_element_type=jnp.float32)
        k2 = jnp.dot(x2, wk_ref[h], preferred_element_type=jnp.float32)
        v2 = jnp.dot(x2, wv_ref[h], preferred_element_type=jnp.float32)
        qh = q2.reshape(B, N, qkv_dim)
        kh = k2.reshape(B, N, qkv_dim)
        vh = v2.reshape(B, N, qkv_dim)

        # Batched attention scores: contract over D directly (no k transpose).
        s = jnp.einsum('bnd,bmd->bnm', qh, kh,
                       preferred_element_type=jnp.float32) * inv_sqrt_d
        s = s - jnp.max(s, axis=-1, keepdims=True)      # stable softmax
        e = jnp.exp(s)
        w = e * pl.reciprocal(jnp.sum(e, axis=-1, keepdims=True), approx=True)
        oh = jnp.einsum('bnm,bmd->bnd', w, vh,
                        preferred_element_type=jnp.float32)       # (B, N, D)

        # Fold multi_head_combine's concat: accumulate per-head (D, E) blocks.
        contrib = jnp.dot(oh.reshape(B * N, qkv_dim), wc_ref[h],
                          preferred_element_type=jnp.float32)     # (B*N, E)
        mha = contrib if mha is None else mha + contrib

    mha = mha + bc_ref[...]

    a1 = alpha_ref[0]
    a2 = alpha_ref[1]

    # Add & DynamicTanh normalization #1
    out1 = jnp.tanh(a1 * (x2 + mha)) * n1w_ref[...] + n1b_ref[...]

    # Feed-forward: W2(relu(W1(out1)))
    h1 = jnp.maximum(
        jnp.dot(out1, w1_ref[...], preferred_element_type=jnp.float32)
        + b1_ref[...], 0.0)
    ff = jnp.dot(h1, w2_ref[...], preferred_element_type=jnp.float32) + b2_ref[...]

    # Add & DynamicTanh normalization #2
    out3 = jnp.tanh(a2 * (out1 + ff)) * n2w_ref[...] + n2b_ref[...]

    o_ref[...] = out3.reshape(B, N, E).astype(o_ref.dtype)


# ----------------------------------------------------------------------------
# Wrapper: repack weights head-major, call the kernel once (no grid).
# ----------------------------------------------------------------------------
def decoder_layer(x, params, *, head_num, qkv_dim):
    B, N, E = x.shape
    H, D = head_num, qkv_dim

    # One-time (wrapper-side) weight repacks so the kernel sees head-major
    # layouts and never has to slice the lane dimension.
    wq_h = params["Wq"].reshape(E, H, D).transpose(1, 0, 2)   # (H, E, D)
    wk_h = params["Wk"].reshape(E, H, D).transpose(1, 0, 2)   # (H, E, D)
    wv_h = params["Wv"].reshape(E, H, D).transpose(1, 0, 2)   # (H, E, D)
    wc_h = params["Wc"].reshape(H, D, E)                      # (H, D, E)
    alphas = jnp.concatenate(
        [params["a1"].reshape(1), params["a2"].reshape(1)]).astype(jnp.float32)

    def vmem():
        return pl.BlockSpec(memory_space=pltpu.MemorySpace.VMEM)

    smem = pl.BlockSpec(memory_space=pltpu.MemorySpace.SMEM)

    kern = functools.partial(decoder_layer_kernel,
                             head_num=H, qkv_dim=D)

    return pl.pallas_call(
        kern,
        out_shape=jax.ShapeDtypeStruct((B, N, E), x.dtype),
        in_specs=[vmem() for _ in range(14)] + [smem],
        out_specs=vmem(),
    )(x, wq_h, wk_h, wv_h, wc_h,
      params["bc"],
      params["W1"], params["b1"], params["W2"], params["b2"],
      params["n1w"], params["n1b"], params["n2w"], params["n2b"],
      alphas)


# ----------------------------------------------------------------------------
# Pure-JAX reference (same math, original weight layout) for sanity check.
# ----------------------------------------------------------------------------
def decoder_layer_ref(x, params, *, head_num, qkv_dim):
    B, N, E = x.shape
    q = (x @ params["Wq"]).reshape(B, N, head_num, qkv_dim).transpose(0, 2, 1, 3)
    k = (x @ params["Wk"]).reshape(B, N, head_num, qkv_dim).transpose(0, 2, 1, 3)
    v = (x @ params["Wv"]).reshape(B, N, head_num, qkv_dim).transpose(0, 2, 1, 3)
    s = (q @ k.transpose(0, 1, 3, 2)) / jnp.sqrt(jnp.float32(qkv_dim))
    w = jax.nn.softmax(s, axis=-1)
    o = (w @ v).transpose(0, 2, 1, 3).reshape(B, N, head_num * qkv_dim)
    mha = o @ params["Wc"] + params["bc"]
    out1 = jnp.tanh(params["a1"][0, 0] * (x + mha)) * params["n1w"] + params["n1b"]
    ff = jnp.maximum(out1 @ params["W1"] + params["b1"], 0.0) @ params["W2"] + params["b2"]
    out3 = jnp.tanh(params["a2"][0, 0] * (out1 + ff)) * params["n2w"] + params["n2b"]
    return out3


# ----------------------------------------------------------------------------
# Main
# ----------------------------------------------------------------------------
if __name__ == "__main__":
    # model_params
    B, N = 2, 8
    embedding_dim = 32
    head_num = 4
    qkv_dim = 8
    ff_hidden_dim = 64
    HD = head_num * qkv_dim

    key = jax.random.PRNGKey(0)
    ks = jax.random.split(key, 10)

    def init(k, shape, scale=0.1):
        return (scale * jax.random.normal(k, shape)).astype(jnp.float32)

    params = {
        "Wq": init(ks[0], (embedding_dim, HD)),
        "Wk": init(ks[1], (embedding_dim, HD)),
        "Wv": init(ks[2], (embedding_dim, HD)),
        "Wc": init(ks[3], (HD, embedding_dim)),
        "bc": init(ks[4], (1, embedding_dim)),
        "W1": init(ks[5], (embedding_dim, ff_hidden_dim)),
        "b1": init(ks[6], (1, ff_hidden_dim)),
        "W2": init(ks[7], (ff_hidden_dim, embedding_dim)),
        "b2": init(ks[8], (1, embedding_dim)),
        # DynamicTanhNormalization init: weight=1, bias=0, alpha=0.5
        "n1w": jnp.ones((1, embedding_dim), jnp.float32),
        "n1b": jnp.zeros((1, embedding_dim), jnp.float32),
        "a1": jnp.full((1, 1), 0.5, jnp.float32),
        "n2w": jnp.ones((1, embedding_dim), jnp.float32),
        "n2b": jnp.zeros((1, embedding_dim), jnp.float32),
        "a2": jnp.full((1, 1), 0.5, jnp.float32),
    }

    x = init(ks[9], (B, N, embedding_dim), scale=1.0)

    out = decoder_layer(x, params, head_num=head_num, qkv_dim=qkv_dim)
    out = jax.block_until_ready(out)

    ref = jax.block_until_ready(
        decoder_layer_ref(x, params, head_num=head_num, qkv_dim=qkv_dim))

    np.testing.assert_allclose(np.asarray(out), np.asarray(ref),
                               rtol=1e-2, atol=1e-2)
    print("KERNEL_OK")
</pallas_src>

<mosaic_0001>
module attributes {stable_mosaic.version = 11 : i64} {
  func.func @decoder_layer_kernel(%arg0: memref<2x8x32xf32, #tpu.memory_space<vmem>>, %arg1: memref<4x32x8xf32, #tpu.memory_space<vmem>>, %arg2: memref<4x32x8xf32, #tpu.memory_space<vmem>>, %arg3: memref<4x32x8xf32, #tpu.memory_space<vmem>>, %arg4: memref<4x8x32xf32, #tpu.memory_space<vmem>>, %arg5: memref<1x32xf32, #tpu.memory_space<vmem>>, %arg6: memref<32x64xf32, #tpu.memory_space<vmem>>, %arg7: memref<1x64xf32, #tpu.memory_space<vmem>>, %arg8: memref<64x32xf32, #tpu.memory_space<vmem>>, %arg9: memref<1x32xf32, #tpu.memory_space<vmem>>, %arg10: memref<1x32xf32, #tpu.memory_space<vmem>>, %arg11: memref<1x32xf32, #tpu.memory_space<vmem>>, %arg12: memref<1x32xf32, #tpu.memory_space<vmem>>, %arg13: memref<1x32xf32, #tpu.memory_space<vmem>>, %arg14: memref<2xf32, #tpu.memory_space<smem>>, %arg15: memref<2x8x32xf32, #tpu.memory_space<vmem>>) attributes {dimension_semantics = [], scalar_prefetch = 0 : i64, scratch_operands = 0 : i64, tpu.core_type = #tpu.core_type<tc>} {
    %c0 = arith.constant 0 : index
    %c0_0 = arith.constant 0 : index
    %c0_1 = arith.constant 0 : index
    %0 = vector.load %arg0[%c0, %c0_0, %c0_1] : memref<2x8x32xf32, #tpu.memory_space<vmem>>, vector<2x8x32xf32>
    %1 = vector.shape_cast %0 : vector<2x8x32xf32> to vector<16x32xf32>
    %c0_2 = arith.constant 0 : index
    %c0_3 = arith.constant 0 : index
    %c0_4 = arith.constant 0 : index
    %2 = vector.load %arg1[%c0_2, %c0_3, %c0_4] : memref<4x32x8xf32, #tpu.memory_space<vmem>>, vector<1x32x8xf32>
    %3 = vector.shape_cast %2 : vector<1x32x8xf32> to vector<32x8xf32>
    %cst = arith.constant dense<0.000000e+00> : vector<16x8xf32>
    %4 = tpu.matmul %1, %3, %cst {dimension_numbers = #tpu.dot_dimension_numbers<[1], [0], [0], [1], [0, 0, 1, 1], [], []>} : vector<16x32xf32>, vector<32x8xf32>, vector<16x8xf32> -> vector<16x8xf32>
    %c0_5 = arith.constant 0 : index
    %c0_6 = arith.constant 0 : index
    %c0_7 = arith.constant 0 : index
    %5 = vector.load %arg2[%c0_5, %c0_6, %c0_7] : memref<4x32x8xf32, #tpu.memory_space<vmem>>, vector<1x32x8xf32>
    %6 = vector.shape_cast %5 : vector<1x32x8xf32> to vector<32x8xf32>
    %cst_8 = arith.constant dense<0.000000e+00> : vector<16x8xf32>
    %7 = tpu.matmul %1, %6, %cst_8 {dimension_numbers = #tpu.dot_dimension_numbers<[1], [0], [0], [1], [0, 0, 1, 1], [], []>} : vector<16x32xf32>, vector<32x8xf32>, vector<16x8xf32> -> vector<16x8xf32>
    %c0_9 = arith.constant 0 : index
    %c0_10 = arith.constant 0 : index
    %c0_11 = arith.constant 0 : index
    %8 = vector.load %arg3[%c0_9, %c0_10, %c0_11] : memref<4x32x8xf32, #tpu.memory_space<vmem>>, vector<1x32x8xf32>
    %9 = vector.shape_cast %8 : vector<1x32x8xf32> to vector<32x8xf32>
    %cst_12 = arith.constant dense<0.000000e+00> : vector<16x8xf32>
    %10 = tpu.matmul %1, %9, %cst_12 {dimension_numbers = #tpu.dot_dimension_numbers<[1], [0], [0], [1], [0, 0, 1, 1], [], []>} : vector<16x32xf32>, vector<32x8xf32>, vector<16x8xf32> -> vector<16x8xf32>
    %11 = vector.shape_cast %4 : vector<16x8xf32> to vector<2x8x8xf32>
    %12 = vector.shape_cast %7 : vector<16x8xf32> to vector<2x8x8xf32>
    %13 = vector.shape_cast %10 : vector<16x8xf32> to vector<2x8x8xf32>
    "tpu.trace_start"() <{level = 10 : i32, message = "bnd,bmd->bnm"}> : () -> ()
    %cst_13 = arith.constant dense<0.000000e+00> : vector<2x8x8xf32>
    %14 = tpu.matmul %11, %12, %cst_13 {dimension_numbers = #tpu.dot_dimension_numbers<[2], [2], [1], [1], [0, 0, 0, 1, 1, 1], [0], [0]>} : vector<2x8x8xf32>, vector<2x8x8xf32>, vector<2x8x8xf32> -> vector<2x8x8xf32>
    "tpu.trace_stop"() : () -> ()
    %cst_14 = arith.constant 0.353553385 : f32
    %15 = vector.broadcast %cst_14 : f32 to vector<2x8x8xf32>
    %16 = arith.mulf %14, %15 : vector<2x8x8xf32>
    %cst_15 = arith.constant dense<0xFF800000> : vector<2x8xf32>
    %17 = vector.multi_reduction <maximumf>, %16, %cst_15 [2] : vector<2x8x8xf32> to vector<2x8xf32>
    %18 = vector.shape_cast %17 : vector<2x8xf32> to vector<2x8x1xf32>
    %19 = vector.broadcast %18 : vector<2x8x1xf32> to vector<2x8x8xf32>
    %20 = arith.subf %16, %19 : vector<2x8x8xf32>
    %21 = math.exp %20 : vector<2x8x8xf32>
    %cst_16 = arith.constant dense<0.000000e+00> : vector<2x8xf32>
    %22 = vector.multi_reduction <add>, %21, %cst_16 [2] : vector<2x8x8xf32> to vector<2x8xf32>
    %23 = vector.shape_cast %22 : vector<2x8xf32> to vector<2x8x1xf32>
    %24 = tpu.reciprocal %23 {approx = true} : vector<2x8x1xf32> -> vector<2x8x1xf32>
    %25 = vector.broadcast %24 : vector<2x8x1xf32> to vector<2x8x8xf32>
    %26 = arith.mulf %21, %25 : vector<2x8x8xf32>
    "tpu.trace_start"() <{level = 10 : i32, message = "bnm,bmd->bnd"}> : () -> ()
    %cst_17 = arith.constant dense<0.000000e+00> : vector<2x8x8xf32>
    %27 = tpu.matmul %26, %13, %cst_17 {dimension_numbers = #tpu.dot_dimension_numbers<[2], [1], [1], [2], [0, 0, 0, 1, 1, 2], [0], [0]>} : vector<2x8x8xf32>, vector<2x8x8xf32>, vector<2x8x8xf32> -> vector<2x8x8xf32>
    "tpu.trace_stop"() : () -> ()
    %28 = vector.shape_cast %27 : vector<2x8x8xf32> to vector<16x8xf32>
    %c0_18 = arith.constant 0 : index
    %c0_19 = arith.constant 0 : index
    %c0_20 = arith.constant 0 : index
    %29 = vector.load %arg4[%c0_18, %c0_19, %c0_20] : memref<4x8x32xf32, #tpu.memory_space<vmem>>, vector<1x8x32xf32>
    %30 = vector.shape_cast %29 : vector<1x8x32xf32> to vector<8x32xf32>
    %cst_21 = arith.constant dense<0.000000e+00> : vector<16x32xf32>
    %31 = tpu.matmul %28, %30, %cst_21 {dimension_numbers = #tpu.dot_dimension_numbers<[1], [0], [0], [1], [0, 0, 1, 1], [], []>} : vector<16x8xf32>, vector<8x32xf32>, vector<16x32xf32> -> vector<16x32xf32>
    %c1 = arith.constant 1 : index
    %c0_22 = arith.constant 0 : index
    %c0_23 = arith.constant 0 : index
    %32 = vector.load %arg1[%c1, %c0_22, %c0_23] : memref<4x32x8xf32, #tpu.memory_space<vmem>>, vector<1x32x8xf32>
    %33 = vector.shape_cast %32 : vector<1x32x8xf32> to vector<32x8xf32>
    %cst_24 = arith.constant dense<0.000000e+00> : vector<16x8xf32>
    %34 = tpu.matmul %1, %33, %cst_24 {dimension_numbers = #tpu.dot_dimension_numbers<[1], [0], [0], [1], [0, 0, 1, 1], [], []>} : vector<16x32xf32>, vector<32x8xf32>, vector<16x8xf32> -> vector<16x8xf32>
    %c1_25 = arith.constant 1 : index
    %c0_26 = arith.constant 0 : index
    %c0_27 = arith.constant 0 : index
    %35 = vector.load %arg2[%c1_25, %c0_26, %c0_27] : memref<4x32x8xf32, #tpu.memory_space<vmem>>, vector<1x32x8xf32>
    %36 = vector.shape_cast %35 : vector<1x32x8xf32> to vector<32x8xf32>
    %cst_28 = arith.constant dense<0.000000e+00> : vector<16x8xf32>
    %37 = tpu.matmul %1, %36, %cst_28 {dimension_numbers = #tpu.dot_dimension_numbers<[1], [0], [0], [1], [0, 0, 1, 1], [], []>} : vector<16x32xf32>, vector<32x8xf32>, vector<16x8xf32> -> vector<16x8xf32>
    %c1_29 = arith.constant 1 : index
    %c0_30 = arith.constant 0 : index
    %c0_31 = arith.constant 0 : index
    %38 = vector.load %arg3[%c1_29, %c0_30, %c0_31] : memref<4x32x8xf32, #tpu.memory_space<vmem>>, vector<1x32x8xf32>
    %39 = vector.shape_cast %38 : vector<1x32x8xf32> to vector<32x8xf32>
    %cst_32 = arith.constant dense<0.000000e+00> : vector<16x8xf32>
    %40 = tpu.matmul %1, %39, %cst_32 {dimension_numbers = #tpu.dot_dimension_numbers<[1], [0], [0], [1], [0, 0, 1, 1], [], []>} : vector<16x32xf32>, vector<32x8xf32>, vector<16x8xf32> -> vector<16x8xf32>
    %41 = vector.shape_cast %34 : vector<16x8xf32> to vector<2x8x8xf32>
    %42 = vector.shape_cast %37 : vector<16x8xf32> to vector<2x8x8xf32>
    %43 = vector.shape_cast %40 : vector<16x8xf32> to vector<2x8x8xf32>
    "tpu.trace_start"() <{level = 10 : i32, message = "bnd,bmd->bnm"}> : () -> ()
    %cst_33 = arith.constant dense<0.000000e+00> : vector<2x8x8xf32>
    %44 = tpu.matmul %41, %42, %cst_33 {dimension_numbers = #tpu.dot_dimension_numbers<[2], [2], [1], [1], [0, 0, 0, 1, 1, 1], [0], [0]>} : vector<2x8x8xf32>, vector<2x8x8xf32>, vector<2x8x8xf32> -> vector<2x8x8xf32>
    "tpu.trace_stop"() : () -> ()
    %cst_34 = arith.constant 0.353553385 : f32
    %45 = vector.broadcast %cst_34 : f32 to vector<2x8x8xf32>
    %46 = arith.mulf %44, %45 : vector<2x8x8xf32>
    %cst_35 = arith.constant dense<0xFF800000> : vector<2x8xf32>
    %47 = vector.multi_reduction <maximumf>, %46, %cst_35 [2] : vector<2x8x8xf32> to vector<2x8xf32>
    %48 = vector.shape_cast %47 : vector<2x8xf32> to vector<2x8x1xf32>
    %49 = vector.broadcast %48 : vector<2x8x1xf32> to vector<2x8x8xf32>
    %50 = arith.subf %46, %49 : vector<2x8x8xf32>
    %51 = math.exp %50 : vector<2x8x8xf32>
    %cst_36 = arith.constant dense<0.000000e+00> : vector<2x8xf32>
    %52 = vector.multi_reduction <add>, %51, %cst_36 [2] : vector<2x8x8xf32> to vector<2x8xf32>
    %53 = vector.shape_cast %52 : vector<2x8xf32> to vector<2x8x1xf32>
    %54 = tpu.reciprocal %53 {approx = true} : vector<2x8x1xf32> -> vector<2x8x1xf32>
    %55 = vector.broadcast %54 : vector<2x8x1xf32> to vector<2x8x8xf32>
    %56 = arith.mulf %51, %55 : vector<2x8x8xf32>
    "tpu.trace_start"() <{level = 10 : i32, message = "bnm,bmd->bnd"}> : () -> ()
    %cst_37 = arith.constant dense<0.000000e+00> : vector<2x8x8xf32>
    %57 = tpu.matmul %56, %43, %cst_37 {dimension_numbers = #tpu.dot_dimension_numbers<[2], [1], [1], [2], [0, 0, 0, 1, 1, 2], [0], [0]>} : vector<2x8x8xf32>, vector<2x8x8xf32>, vector<2x8x8xf32> -> vector<2x8x8xf32>
    "tpu.trace_stop"() : () -> ()
    %58 = vector.shape_cast %57 : vector<2x8x8xf32> to vector<16x8xf32>
    %c1_38 = arith.constant 1 : index
    %c0_39 = arith.constant 0 : index
    %c0_40 = arith.constant 0 : index
    %59 = vector.load %arg4[%c1_38, %c0_39, %c0_40] : memref<4x8x32xf32, #tpu.memory_space<vmem>>, vector<1x8x32xf32>
    %60 = vector.shape_cast %59 : vector<1x8x32xf32> to vector<8x32xf32>
    %cst_41 = arith.constant dense<0.000000e+00> : vector<16x32xf32>
    %61 = tpu.matmul %58, %60, %cst_41 {dimension_numbers = #tpu.dot_dimension_numbers<[1], [0], [0], [1], [0, 0, 1, 1], [], []>} : vector<16x8xf32>, vector<8x32xf32>, vector<16x32xf32> -> vector<16x32xf32>
    %62 = arith.addf %31, %61 : vector<16x32xf32>
    %c2 = arith.constant 2 : index
    %c0_42 = arith.constant 0 : index
    %c0_43 = arith.constant 0 : index
    %63 = vector.load %arg1[%c2, %c0_42, %c0_43] : memref<4x32x8xf32, #tpu.memory_space<vmem>>, vector<1x32x8xf32>
    %64 = vector.shape_cast %63 : vector<1x32x8xf32> to vector<32x8xf32>
    %cst_44 = arith.constant dense<0.000000e+00> : vector<16x8xf32>
    %65 = tpu.matmul %1, %64, %cst_44 {dimension_numbers = #tpu.dot_dimension_numbers<[1], [0], [0], [1], [0, 0, 1, 1], [], []>} : vector<16x32xf32>, vector<32x8xf32>, vector<16x8xf32> -> vector<16x8xf32>
    %c2_45 = arith.constant 2 : index
    %c0_46 = arith.constant 0 : index
    %c0_47 = arith.constant 0 : index
    %66 = vector.load %arg2[%c2_45, %c0_46, %c0_47] : memref<4x32x8xf32, #tpu.memory_space<vmem>>, vector<1x32x8xf32>
    %67 = vector.shape_cast %66 : vector<1x32x8xf32> to vector<32x8xf32>
    %cst_48 = arith.constant dense<0.000000e+00> : vector<16x8xf32>
    %68 = tpu.matmul %1, %67, %cst_48 {dimension_numbers = #tpu.dot_dimension_numbers<[1], [0], [0], [1], [0, 0, 1, 1], [], []>} : vector<16x32xf32>, vector<32x8xf32>, vector<16x8xf32> -> vector<16x8xf32>
    %c2_49 = arith.constant 2 : index
    %c0_50 = arith.constant 0 : index
    %c0_51 = arith.constant 0 : index
    %69 = vector.load %arg3[%c2_49, %c0_50, %c0_51] : memref<4x32x8xf32, #tpu.memory_space<vmem>>, vector<1x32x8xf32>
    %70 = vector.shape_cast %69 : vector<1x32x8xf32> to vector<32x8xf32>
    %cst_52 = arith.constant dense<0.000000e+00> : vector<16x8xf32>
    %71 = tpu.matmul %1, %70, %cst_52 {dimension_numbers = #tpu.dot_dimension_numbers<[1], [0], [0], [1], [0, 0, 1, 1], [], []>} : vector<16x32xf32>, vector<32x8xf32>, vector<16x8xf32> -> vector<16x8xf32>
    %72 = vector.shape_cast %65 : vector<16x8xf32> to vector<2x8x8xf32>
    %73 = vector.shape_cast %68 : vector<16x8xf32> to vector<2x8x8xf32>
    %74 = vector.shape_cast %71 : vector<16x8xf32> to vector<2x8x8xf32>
    "tpu.trace_start"() <{level = 10 : i32, message = "bnd,bmd->bnm"}> : () -> ()
    %cst_53 = arith.constant dense<0.000000e+00> : vector<2x8x8xf32>
    %75 = tpu.matmul %72, %73, %cst_53 {dimension_numbers = #tpu.dot_dimension_numbers<[2], [2], [1], [1], [0, 0, 0, 1, 1, 1], [0], [0]>} : vector<2x8x8xf32>, vector<2x8x8xf32>, vector<2x8x8xf32> -> vector<2x8x8xf32>
    "tpu.trace_stop"() : () -> ()
    %cst_54 = arith.constant 0.353553385 : f32
    %76 = vector.broadcast %cst_54 : f32 to vector<2x8x8xf32>
    %77 = arith.mulf %75, %76 : vector<2x8x8xf32>
    %cst_55 = arith.constant dense<0xFF800000> : vector<2x8xf32>
    %78 = vector.multi_reduction <maximumf>, %77, %cst_55 [2] : vector<2x8x8xf32> to vector<2x8xf32>
    %79 = vector.shape_cast %78 : vector<2x8xf32> to vector<2x8x1xf32>
    %80 = vector.broadcast %79 : vector<2x8x1xf32> to vector<2x8x8xf32>
    %81 = arith.subf %77, %80 : vector<2x8x8xf32>
    %82 = math.exp %81 : vector<2x8x8xf32>
    %cst_56 = arith.constant dense<0.000000e+00> : vector<2x8xf32>
    %83 = vector.multi_reduction <add>, %82, %cst_56 [2] : vector<2x8x8xf32> to vector<2x8xf32>
    %84 = vector.shape_cast %83 : vector<2x8xf32> to vector<2x8x1xf32>
    %85 = tpu.reciprocal %84 {approx = true} : vector<2x8x1xf32> -> vector<2x8x1xf32>
    %86 = vector.broadcast %85 : vector<2x8x1xf32> to vector<2x8x8xf32>
    %87 = arith.mulf %82, %86 : vector<2x8x8xf32>
    "tpu.trace_start"() <{level = 10 : i32, message = "bnm,bmd->bnd"}> : () -> ()
    %cst_57 = arith.constant dense<0.000000e+00> : vector<2x8x8xf32>
    %88 = tpu.matmul %87, %74, %cst_57 {dimension_numbers = #tpu.dot_dimension_numbers<[2], [1], [1], [2], [0, 0, 0, 1, 1, 2], [0], [0]>} : vector<2x8x8xf32>, vector<2x8x8xf32>, vector<2x8x8xf32> -> vector<2x8x8xf32>
    "tpu.trace_stop"() : () -> ()
    %89 = vector.shape_cast %88 : vector<2x8x8xf32> to vector<16x8xf32>
    %c2_58 = arith.constant 2 : index
    %c0_59 = arith.constant 0 : index
    %c0_60 = arith.constant 0 : index
    %90 = vector.load %arg4[%c2_58, %c0_59, %c0_60] : memref<4x8x32xf32, #tpu.memory_space<vmem>>, vector<1x8x32xf32>
    %91 = vector.shape_cast %90 : vector<1x8x32xf32> to vector<8x32xf32>
    %cst_61 = arith.constant dense<0.000000e+00> : vector<16x32xf32>
    %92 = tpu.matmul %89, %91, %cst_61 {dimension_numbers = #tpu.dot_dimension_numbers<[1], [0], [0], [1], [0, 0, 1, 1], [], []>} : vector<16x8xf32>, vector<8x32xf32>, vector<16x32xf32> -> vector<16x32xf32>
    %93 = arith.addf %62, %92 : vector<16x32xf32>
    %c3 = arith.constant 3 : index
    %c0_62 = arith.constant 0 : index
    %c0_63 = arith.constant 0 : index
    %94 = vector.load %arg1[%c3, %c0_62, %c0_63] : memref<4x32x8xf32, #tpu.memory_space<vmem>>, vector<1x32x8xf32>
    %95 = vector.shape_cast %94 : vector<1x32x8xf32> to vector<32x8xf32>
    %cst_64 = arith.constant dense<0.000000e+00> : vector<16x8xf32>
    %96 = tpu.matmul %1, %95, %cst_64 {dimension_numbers = #tpu.dot_dimension_numbers<[1], [0], [0], [1], [0, 0, 1, 1], [], []>} : vector<16x32xf32>, vector<32x8xf32>, vector<16x8xf32> -> vector<16x8xf32>
    %c3_65 = arith.constant 3 : index
    %c0_66 = arith.constant 0 : index
    %c0_67 = arith.constant 0 : index
    %97 = vector.load %arg2[%c3_65, %c0_66, %c0_67] : memref<4x32x8xf32, #tpu.memory_space<vmem>>, vector<1x32x8xf32>
    %98 = vector.shape_cast %97 : vector<1x32x8xf32> to vector<32x8xf32>
    %cst_68 = arith.constant dense<0.000000e+00> : vector<16x8xf32>
    %99 = tpu.matmul %1, %98, %cst_68 {dimension_numbers = #tpu.dot_dimension_numbers<[1], [0], [0], [1], [0, 0, 1, 1], [], []>} : vector<16x32xf32>, vector<32x8xf32>, vector<16x8xf32> -> vector<16x8xf32>
    %c3_69 = arith.constant 3 : index
    %c0_70 = arith.constant 0 : index
    %c0_71 = arith.constant 0 : index
    %100 = vector.load %arg3[%c3_69, %c0_70, %c0_71] : memref<4x32x8xf32, #tpu.memory_space<vmem>>, vector<1x32x8xf32>
    %101 = vector.shape_cast %100 : vector<1x32x8xf32> to vector<32x8xf32>
    %cst_72 = arith.constant dense<0.000000e+00> : vector<16x8xf32>
    %102 = tpu.matmul %1, %101, %cst_72 {dimension_numbers = #tpu.dot_dimension_numbers<[1], [0], [0], [1], [0, 0, 1, 1], [], []>} : vector<16x32xf32>, vector<32x8xf32>, vector<16x8xf32> -> vector<16x8xf32>
    %103 = vector.shape_cast %96 : vector<16x8xf32> to vector<2x8x8xf32>
    %104 = vector.shape_cast %99 : vector<16x8xf32> to vector<2x8x8xf32>
    %105 = vector.shape_cast %102 : vector<16x8xf32> to vector<2x8x8xf32>
    "tpu.trace_start"() <{level = 10 : i32, message = "bnd,bmd->bnm"}> : () -> ()
    %cst_73 = arith.constant dense<0.000000e+00> : vector<2x8x8xf32>
    %106 = tpu.matmul %103, %104, %cst_73 {dimension_numbers = #tpu.dot_dimension_numbers<[2], [2], [1], [1], [0, 0, 0, 1, 1, 1], [0], [0]>} : vector<2x8x8xf32>, vector<2x8x8xf32>, vector<2x8x8xf32> -> vector<2x8x8xf32>
    "tpu.trace_stop"() : () -> ()
    %cst_74 = arith.constant 0.353553385 : f32
    %107 = vector.broadcast %cst_74 : f32 to vector<2x8x8xf32>
    %108 = arith.mulf %106, %107 : vector<2x8x8xf32>
    %cst_75 = arith.constant dense<0xFF800000> : vector<2x8xf32>
    %109 = vector.multi_reduction <maximumf>, %108, %cst_75 [2] : vector<2x8x8xf32> to vector<2x8xf32>
    %110 = vector.shape_cast %109 : vector<2x8xf32> to vector<2x8x1xf32>
    %111 = vector.broadcast %110 : vector<2x8x1xf32> to vector<2x8x8xf32>
    %112 = arith.subf %108, %111 : vector<2x8x8xf32>
    %113 = math.exp %112 : vector<2x8x8xf32>
    %cst_76 = arith.constant dense<0.000000e+00> : vector<2x8xf32>
    %114 = vector.multi_reduction <add>, %113, %cst_76 [2] : vector<2x8x8xf32> to vector<2x8xf32>
    %115 = vector.shape_cast %114 : vector<2x8xf32> to vector<2x8x1xf32>
    %116 = tpu.reciprocal %115 {approx = true} : vector<2x8x1xf32> -> vector<2x8x1xf32>
    %117 = vector.broadcast %116 : vector<2x8x1xf32> to vector<2x8x8xf32>
    %118 = arith.mulf %113, %117 : vector<2x8x8xf32>
    "tpu.trace_start"() <{level = 10 : i32, message = "bnm,bmd->bnd"}> : () -> ()
    %cst_77 = arith.constant dense<0.000000e+00> : vector<2x8x8xf32>
    %119 = tpu.matmul %118, %105, %cst_77 {dimension_numbers = #tpu.dot_dimension_numbers<[2], [1], [1], [2], [0, 0, 0, 1, 1, 2], [0], [0]>} : vector<2x8x8xf32>, vector<2x8x8xf32>, vector<2x8x8xf32> -> vector<2x8x8xf32>
    "tpu.trace_stop"() : () -> ()
    %120 = vector.shape_cast %119 : vector<2x8x8xf32> to vector<16x8xf32>
    %c3_78 = arith.constant 3 : index
    %c0_79 = arith.constant 0 : index
    %c0_80 = arith.constant 0 : index
    %121 = vector.load %arg4[%c3_78, %c0_79, %c0_80] : memref<4x8x32xf32, #tpu.memory_space<vmem>>, vector<1x8x32xf32>
    %122 = vector.shape_cast %121 : vector<1x8x32xf32> to vector<8x32xf32>
    %cst_81 = arith.constant dense<0.000000e+00> : vector<16x32xf32>
    %123 = tpu.matmul %120, %122, %cst_81 {dimension_numbers = #tpu.dot_dimension_numbers<[1], [0], [0], [1], [0, 0, 1, 1], [], []>} : vector<16x8xf32>, vector<8x32xf32>, vector<16x32xf32> -> vector<16x32xf32>
    %124 = arith.addf %93, %123 : vector<16x32xf32>
    %c0_82 = arith.constant 0 : index
    %c0_83 = arith.constant 0 : index
    %125 = vector.load %arg5[%c0_82, %c0_83] : memref<1x32xf32, #tpu.memory_space<vmem>>, vector<1x32xf32>
    %126 = vector.broadcast %125 : vector<1x32xf32> to vector<16x32xf32>
    %127 = arith.addf %124, %126 : vector<16x32xf32>
    %c0_84 = arith.constant 0 : index
    %128 = memref.load %arg14[%c0_84] : memref<2xf32, #tpu.memory_space<smem>>
    %c1_85 = arith.constant 1 : index
    %129 = memref.load %arg14[%c1_85] : memref<2xf32, #tpu.memory_space<smem>>
    %130 = arith.addf %1, %127 : vector<16x32xf32>
    %131 = vector.broadcast %128 : f32 to vector<16x32xf32>
    %132 = arith.mulf %131, %130 : vector<16x32xf32>
    %133 = math.tanh %132 : vector<16x32xf32>
    %c0_86 = arith.constant 0 : index
    %c0_87 = arith.constant 0 : index
    %134 = vector.load %arg10[%c0_86, %c0_87] : memref<1x32xf32, #tpu.memory_space<vmem>>, vector<1x32xf32>
    %135 = vector.broadcast %134 : vector<1x32xf32> to vector<16x32xf32>
    %136 = arith.mulf %133, %135 : vector<16x32xf32>
    %c0_88 = arith.constant 0 : index
    %c0_89 = arith.constant 0 : index
    %137 = vector.load %arg11[%c0_88, %c0_89] : memref<1x32xf32, #tpu.memory_space<vmem>>, vector<1x32xf32>
    %138 = vector.broadcast %137 : vector<1x32xf32> to vector<16x32xf32>
    %139 = arith.addf %136, %138 : vector<16x32xf32>
    %c0_90 = arith.constant 0 : index
    %c0_91 = arith.constant 0 : index
    %140 = vector.load %arg6[%c0_90, %c0_91] : memref<32x64xf32, #tpu.memory_space<vmem>>, vector<32x64xf32>
    %cst_92 = arith.constant dense<0.000000e+00> : vector<16x64xf32>
    %141 = tpu.matmul %139, %140, %cst_92 {dimension_numbers = #tpu.dot_dimension_numbers<[1], [0], [0], [1], [0, 0, 1, 1], [], []>} : vector<16x32xf32>, vector<32x64xf32>, vector<16x64xf32> -> vector<16x64xf32>
    %c0_93 = arith.constant 0 : index
    %c0_94 = arith.constant 0 : index
    %142 = vector.load %arg7[%c0_93, %c0_94] : memref<1x64xf32, #tpu.memory_space<vmem>>, vector<1x64xf32>
    %143 = vector.broadcast %142 : vector<1x64xf32> to vector<16x64xf32>
    %144 = arith.addf %141, %143 : vector<16x64xf32>
    %cst_95 = arith.constant 0.000000e+00 : f32
    %145 = vector.broadcast %cst_95 : f32 to vector<16x64xf32>
    %146 = arith.maximumf %144, %145 : vector<16x64xf32>
    %c0_96 = arith.constant 0 : index
    %c0_97 = arith.constant 0 : index
    %147 = vector.load %arg8[%c0_96, %c0_97] : memref<64x32xf32, #tpu.memory_space<vmem>>, vector<64x32xf32>
    %cst_98 = arith.constant dense<0.000000e+00> : vector<16x32xf32>
    %148 = tpu.matmul %146, %147, %cst_98 {dimension_numbers = #tpu.dot_dimension_numbers<[1], [0], [0], [1], [0, 0, 1, 1], [], []>} : vector<16x64xf32>, vector<64x32xf32>, vector<16x32xf32> -> vector<16x32xf32>
    %c0_99 = arith.constant 0 : index
    %c0_100 = arith.constant 0 : index
    %149 = vector.load %arg9[%c0_99, %c0_100] : memref<1x32xf32, #tpu.memory_space<vmem>>, vector<1x32xf32>
    %150 = vector.broadcast %149 : vector<1x32xf32> to vector<16x32xf32>
    %151 = arith.addf %148, %150 : vector<16x32xf32>
    %152 = arith.addf %139, %151 : vector<16x32xf32>
    %153 = vector.broadcast %129 : f32 to vector<16x32xf32>
    %154 = arith.mulf %153, %152 : vector<16x32xf32>
    %155 = math.tanh %154 : vector<16x32xf32>
    %c0_101 = arith.constant 0 : index
    %c0_102 = arith.constant 0 : index
    %156 = vector.load %arg12[%c0_101, %c0_102] : memref<1x32xf32, #tpu.memory_space<vmem>>, vector<1x32xf32>
    %157 = vector.broadcast %156 : vector<1x32xf32> to vector<16x32xf32>
    %158 = arith.mulf %155, %157 : vector<16x32xf32>
    %c0_103 = arith.constant 0 : index
    %c0_104 = arith.constant 0 : index
    %159 = vector.load %arg13[%c0_103, %c0_104] : memref<1x32xf32, #tpu.memory_space<vmem>>, vector<1x32xf32>
    %160 = vector.broadcast %159 : vector<1x32xf32> to vector<16x32xf32>
    %161 = arith.addf %158, %160 : vector<16x32xf32>
    %162 = vector.shape_cast %161 : vector<16x32xf32> to vector<2x8x32xf32>
    %c0_105 = arith.constant 0 : index
    %c0_106 = arith.constant 0 : index
    %c0_107 = arith.constant 0 : index
    %163 = vector.load %arg15[%c0_105, %c0_106, %c0_107] : memref<2x8x32xf32, #tpu.memory_space<vmem>>, vector<2x8x32xf32>
    tpu.vector_store %arg15[%c0_105, %c0_106, %c0_107], %162 {strides = array<i32>} : memref<2x8x32xf32, #tpu.memory_space<vmem>>, vector<2x8x32xf32>,
    return
  }
}

</mosaic_0001>

<bundles_post_ra>
// kernel: tpu_custom_call.1
= control target key start
LH: loop header
LB: loop body
LE: loop exit
PB: predicated region body
PF: predicated region fallthrough
CT: control target
= control target key end

     0   :  { %20 = vsyncpa [#allocation4], 0  ;;  %s1788_s0 = inlined_call_operand.vmem [shape: f32[2,8,32], index: 0, kind: input, shape index: {}]   ;;  %s1789_s1 = inlined_call_operand.vmem [shape: f32[4,32,8], index: 1, kind: input, shape index: {}]   ;;  %s1790_s2 = inlined_call_operand.vmem [shape: f32[4,32,8], index: 2, kind: input, shape index: {}]   ;;  %s1791_s3 = inlined_call_operand.vmem [shape: f32[4,32,8], index: 3, kind: input, shape index: {}]   ;;  %s1792_s4 = inlined_call_operand.vmem [shape: f32[4,8,32], index: 4, kind: input, shape index: {}]   ;;  %s1793_s5 = inlined_call_operand.vmem [shape: f32[1,32], index: 5, kind: input, shape index: {}]   ;;  %s1794_s6 = inlined_call_operand.vmem [shape: f32[32,64], index: 6, kind: input, shape index: {}]   ;;  %s1795_s7 = inlined_call_operand.vmem [shape: f32[1,64], index: 7, kind: input, shape index: {}]   ;;  %s1796_s8 = inlined_call_operand.vmem [shape: f32[64,32], index: 8, kind: input, shape index: {}]   ;;  %s1797_s9 = inlined_call_operand.vmem [shape: f32[1,32], index: 9, kind: input, shape index: {}]   ;;  %s1798_s10 = inlined_call_operand.vmem [shape: f32[1,32], index: 10, kind: input, shape index: {}]   ;;  %s1799_s11 = inlined_call_operand.vmem [shape: f32[1,32], index: 11, kind: input, shape index: {}]   ;;  %s1800_s12 = inlined_call_operand.vmem [shape: f32[1,32], index: 12, kind: input, shape index: {}]   ;;  %s1801_s13 = inlined_call_operand.vmem [shape: f32[1,32], index: 13, kind: input, shape index: {}]   ;;  %s1802_s14 = inlined_call_operand.vmem [shape: f32[2], index: 14, kind: input, shape index: {}]   ;;  %s1803_s15 = inlined_call_operand.hbm [shape: f32[2,8,32], index: 15, kind: output, shape index: {}]  }
   0x1   :  { %21 = vsyncpa [#allocation3], 0  ;;  %s55_s20 = sshll.u32 %s1802_s14, 4  ;;  %s1361_s21 = smov [#allocation2]   ;;  %s56_s20 = int_to_ptr.vmem [resolvable:$true] %s55_s20 }
   0x2   :  { %58 = dma.vmem_to_smem %s56_s20, 16, %s1361_s21, [#allocation4]  }
   0x3   :  { %1357 = dma.done.wait [#allocation4], 16  }
   0x4   :  { %1358 = vsyncadd [#allocation4], 4294967280 }
   0x5   :  { %63 = sfence }
   0x6   :  { %v103_v0 = vld [vmem:[%s1790_s2 + $0x18] sm:$0xff]  ;;  %v102_v1 = vld [vmem:[%s1790_s2 + $0x10] sm:$0xff]  ;;  %v101_v4 = vld [vmem:[%s1790_s2 + $0x8] sm:$0xff]  ;;  %vm70_vm0 = vcmask 261120   ;;  %vm154_vm1 = vcmask 64512   ;;  %s1028_s16 = sld [smem:[#allocation2]] }
   0x7   :  { %v69_v2 = vld [vmem:[%s1789_s1 + $0x18] sm:$0xff]  ;;  %116 = vmatpush.msra.mxu1 %v103_v0  ;;  %v68_v3 = vld [vmem:[%s1789_s1 + $0x10] sm:$0xff]  ;;  %v100_v5 = vld [vmem:[%s1790_s2] sm:$0xff]  ;;  %vm1100_vm2 = vcmask 523264   ;;  %s1157_s22 = sshll.u32 %s1803_s15, 4  ;;  %s1158_s22 = int_to_ptr.hbm [resolvable:$true] %s1157_s22 }
   0x8   :  { %89 = vmatpush.msra.mxu0 %v69_v2  ;;  %v67_v6 = vld [vmem:[%s1789_s1 + $0x8] sm:$0xff]  ;;  %v66_v7 = vld [vmem:[%s1789_s1] sm:$0xff]  ;;  %v130_v14 = vld [vmem:[%s1791_s3 + $0x18] sm:$0xff] }
   0x9   :  { %117 = vmatpush.msra.mxu1 %v102_v1  ;;  %v1475_v8 = vld [vmem:[%s1788_s0] sm:$0xff]  ;;  %v1484_v9 = vld [vmem:[%s1788_s0 + $0x8] sm:$0xff]  ;;  %v129_v15 = vld [vmem:[%s1791_s3 + $0x10] sm:$0xff]  ;;  %143 = vmatpush.msra.mxu2 %v130_v14 }
   0xa   :  { %90 = vmatpush.msra.mxu0 %v68_v3  ;;  %v128_v16 = vld [vmem:[%s1791_s3 + $0x8] sm:$0xff]  ;;  %v127_v23 = vld [vmem:[%s1791_s3] sm:$0xff]  ;;  %v1191_v24 = vld [vmem:[%s1790_s2 + $0x38] sm:$0xff] }
   0xb   :  { %118 = vmatpush.msra.mxu1 %v101_v4  ;;  %144 = vmatpush.msra.mxu2 %v129_v15  ;;  %v1190_v25 = vld [vmem:[%s1790_s2 + $0x30] sm:$0xff]  ;;  %v1189_v26 = vld [vmem:[%s1790_s2 + $0x28] sm:$0xff]  ;;  %v1185_v27 = vld [vmem:[%s1789_s1 + $0x38] sm:$0xff] }
   0xc   :  { %91 = vmatpush.msra.mxu0 %v67_v6  ;;  %v1188_v28 = vld [vmem:[%s1790_s2 + $0x20] sm:$0xff]  ;;  %v1184_v29 = vld [vmem:[%s1789_s1 + $0x30] sm:$0xff]  ;;  %v1183_v30 = vld [vmem:[%s1789_s1 + $0x28] sm:$0xff] }
   0xd   :  { %119 = vmatpush.msra.mxu1 %v100_v5  ;;  %145 = vmatpush.msra.mxu2 %v128_v16  ;;  %v1182_v31 = vld [vmem:[%s1789_s1 + $0x20] sm:$0xff]  ;;  %v1197_v55 = vld [vmem:[%s1791_s3 + $0x38] sm:$0xff]  ;;  %v1196_v0 = vld [vmem:[%s1791_s3 + $0x30] sm:$0xff] }
   0xe   :  { %92 = vmatpush.msra.mxu0 %v66_v7  ;;  %1172 = vmatmul.msk.f32.vlgmr.msra.gmra.mxu1 %vm70_vm0, %v1475_v8  ;;  %v277_v54 = vld [vmem:[%s1792_s4] sm:$0xff]  ;;  %v1195_v1 = vld [vmem:[%s1791_s3 + $0x28] sm:$0xff] }
   0xf   :  { %1170 = vmatmul.msk.f32.vlgmr.msra.gmra.mxu0 %vm70_vm0, %v1475_v8  ;;  %146 = vmatpush.msra.mxu2 %v127_v23  ;;  %v1194_v2 = vld [vmem:[%s1791_s3 + $0x20] sm:$0xff]  ;;  %v1212_v23 = vld [vmem:[%s1789_s1 + $0x48] sm:$0xff] }
  0x10   :  { %1174 = vmatmul.msk.f32.vlgmr.msra.gmra.mxu2 %vm70_vm0, %v1475_v8  ;;  %295 = vmatpush.msrb.mxu1 %v1185_v27 }
  0x11   :  { %323 = vmatpush.msrb.mxu2 %v1191_v24  ;;  %v1211_v24 = vld [vmem:[%s1789_s1 + $0x40] sm:$0xff] }
  0x12   :  { %296 = vmatpush.msrb.mxu1 %v1184_v29 }
  0x13   :  { %324 = vmatpush.msrb.mxu2 %v1190_v25 }
  0x14   :  { %297 = vmatpush.msrb.mxu1 %v1183_v30 }
  0x15   :  { %325 = vmatpush.msrb.mxu2 %v1189_v26 }
  0x16   :  { %1173 = vmatmul.msk.f32.gmra.mxu1 %vm70_vm0, %v1484_v9 }
  0x17   :  { %1171 = vmatmul.msk.f32.gmra.mxu0 %vm70_vm0, %v1484_v9  ;;  %326 = vmatpush.msrb.mxu2 %v1188_v28 }
  0x18   :  { %1175 = vmatmul.msk.f32.gmra.mxu2 %vm70_vm0, %v1484_v9  ;;  %298 = vmatpush.msrb.mxu1 %v1182_v31  ;;  %v1206_v31 = vld [vmem:[%s1792_s4 + $0x8] sm:$0xff] }
  0x1e   :  { %1186 = vmatmul.msk.f32.vlgmr.msrb.gmra.mxu1 %vm70_vm0, %v1475_v8 }
  0x20   :  { %1192 = vmatmul.msk.f32.vlgmr.msrb.gmra.mxu2 %vm70_vm0, %v1475_v8 }
  0x26   :  { %1187 = vmatmul.msk.f32.gmra.mxu1 %vm70_vm0, %v1484_v9 }
  0x28   :  { %1193 = vmatmul.msk.f32.gmra.mxu2 %vm70_vm0, %v1484_v9 }
  0x8b   :  { %v121_v10 = vpop.f32.mrf.mxu1 }
  0x8c   :  { %v94_v11 = vpop.f32.mrf.mxu0  ;;  %1176 = vmatpush.xpose.msk.msra.mxu3 %vm154_vm1, %v121_v10 }
  0x8f   :  { %1177 = vmatmul.msk.f32.vlgmr.msra.gmra.mxu3 %vm154_vm1, %v94_v11 }
  0x93   :  { %v124_v12 = vpop.f32.mrf.mxu1  ;;  %v148_v42 = vpop.f32.mrf.mxu2 }
  0x94   :  { %1178 = vmatpush.xpose.msk.msrb.mxu3 %vm154_vm1, %v124_v12  ;;  %v97_v13 = vpop.f32.mrf.mxu0 }
  0x97   :  { %1179 = vmatmul.msk.f32.vlgmr.msrb.gmra.mxu3 %vm154_vm1, %v97_v13 }
  0x98   :  { %249 = vmatpush.msra.mxu3 %v148_v42 }
  0x9a   :  { %351 = vmatpush.msrb.mxu3 %v1197_v55 }
  0x9b   :  { %v151_v43 = vpop.f32.mrf.mxu2  ;;  %v300_v52 = vpop.f32.mrf.mxu1 }
  0x9c   :  { %272 = vmatpush.msrb.mxu0 %v151_v43  ;;  %352 = vmatpush.msrb.mxu3 %v1196_v0  ;;  %v1246_v0 = vld [vmem:[%s1790_s2 + $0x70] sm:$0xff] }
  0x9e   :  { %353 = vmatpush.msrb.mxu3 %v1195_v1  ;;  %v1241_v1 = vld [vmem:[%s1789_s1 + $0x78] sm:$0xff] }
  0xa0   :  { %354 = vmatpush.msrb.mxu3 %v1194_v2  ;;  %v1245_v2 = vld [vmem:[%s1790_s2 + $0x68] sm:$0xff] }
  0xa3   :  { %v328_v44 = vpop.f32.mrf.mxu2  ;;  %v303_v53 = vpop.f32.mrf.mxu1 }
  0xa4   :  { %1200 = vmatpush.xpose.msk.msra.mxu0 %vm154_vm1, %v328_v44 }
  0xab   :  { %v331_v51 = vpop.f32.mrf.mxu2 }
 0x112   :  { %v178_v17 = vpop.f32.mrf.mxu3 }
 0x113   :  { %v207_v18 = vmul.f32 0.35355338, %v178_v17  ;;  %v1220_v17 = vld [vmem:[%s1790_s2 + $0x58] sm:$0xff] }
 0x115   :  { %v209_v19 = vsel %vm154_vm1, %v207_v18, -inf }
 0x116   :  { %210 = vmax.xlane.f32.xlu1 %v209_v19  ;;  %v1218_v19 = vld [vmem:[%s1790_s2 + $0x48] sm:$0xff] }
 0x11a   :  { %v204_v20 = vpop.f32.mrf.mxu3 }
 0x11b   :  { %v208_v21 = vmul.f32 0.35355338, %v204_v20  ;;  %v1217_v20 = vld [vmem:[%s1790_s2 + $0x40] sm:$0xff] }
 0x11d   :  { %v212_v22 = vsel %vm154_vm1, %v208_v21, -inf }
 0x11e   :  { %213 = vmax.xlane.f32.xlu0 %v212_v22  ;;  %v1213_v22 = vld [vmem:[%s1789_s1 + $0x50] sm:$0xff] }
 0x189   :  { %v211_v32 = vpop.xlane.xlu1 %210 }
 0x18a   :  { %v215_v33 = vsub.f32 %v207_v18, %v211_v32  ;;  %v1219_v18 = vld [vmem:[%s1790_s2 + $0x50] sm:$0xff] }
 0x18c   :  { %v217_v34 = vmul.f32 1.442695, %v215_v33 }
 0x18e   :  { %1281 = vpow2.f32 %v217_v34 }
 0x191   :  { %v214_v35 = vpop.xlane.xlu0 %213 }
 0x192   :  { %v216_v36 = vsub.f32 %v208_v21, %v214_v35  ;;  %v1214_v21 = vld [vmem:[%s1789_s1 + $0x58] sm:$0xff] }
 0x194   :  { %v1282_v37 = vpop.eup %1281  ;;  %v219_v38 = vmul.f32 1.442695, %v216_v36 }
 0x195   :  { %v221_v39 = vsel %vm154_vm1, %v1282_v37, 0.0 }
 0x196   :  { %1283 = vpow2.f32 %v219_v38  ;;  %222 = vadd.xlane.f32.xlu1 %v221_v39  ;;  %v1226_v38 = vld [vmem:[%s1791_s3 + $0x58] sm:$0xff]  ;;  %v1225_v39 = vld [vmem:[%s1791_s3 + $0x50] sm:$0xff] }
 0x19c   :  { %v1284_v40 = vpop.eup %1283 }
 0x19d   :  { %v224_v41 = vsel %vm154_vm1, %v1284_v40, 0.0 }
 0x19e   :  { %225 = vadd.xlane.f32.xlu0 %v224_v41  ;;  %v1224_v41 = vld [vmem:[%s1791_s3 + $0x48] sm:$0xff] }
 0x209   :  { %v223_v45 = vpop.xlane.xlu1 %222 }
 0x20a   :  { %1285 = vrcp.f32 %v223_v45 }
 0x210   :  { %v1286_v46 = vpop.eup %1285 }
 0x211   :  { %v229_v47 = vmul.f32 %v1286_v46, %v1282_v37  ;;  %v226_v48 = vpop.xlane.xlu0 %225 }
 0x212   :  { %1287 = vrcp.f32 %v226_v48 }
 0x213   :  { %1180 = vmatmul.msk.f32.vlgmr.msra.gmra.mxu3 %vm154_vm1, %v229_v47 }
 0x214   :  { %507 = vmatpush.msra.mxu3 %v1206_v31 }
 0x218   :  { %v1288_v49 = vpop.eup %1287 }
 0x219   :  { %v230_v50 = vmul.f32 %v1288_v49, %v1284_v40  ;;  %v1223_v49 = vld [vmem:[%s1791_s3 + $0x40] sm:$0xff] }
 0x21b   :  { %1181 = vmatmul.msk.f32.vlgmr.msrb.gmra.mxu0 %vm154_vm1, %v230_v50  ;;  %1198 = vmatmul.msk.f32.vlgmr.msrb.gmra.mxu3 %vm70_vm0, %v1475_v8 }
 0x21c   :  { %1202 = vmatpush.xpose.msk.msrb.mxu0 %vm154_vm1, %v331_v51  ;;  %617 = vmatpush.msrb.mxu3 %v1226_v38  ;;  %v1250_v38 = vld [vmem:[%s1791_s3 + $0x60] sm:$0xff] }
 0x21e   :  { %618 = vmatpush.msrb.mxu3 %v1225_v39 }
 0x220   :  { %619 = vmatpush.msrb.mxu3 %v1224_v41 }
 0x222   :  { %620 = vmatpush.msrb.mxu3 %v1223_v49 }
 0x223   :  { %1201 = vmatmul.msk.f32.vlgmr.msra.gmra.mxu0 %vm154_vm1, %v300_v52  ;;  %1199 = vmatmul.msk.f32.gmra.mxu3 %vm70_vm0, %v1484_v9 }
 0x224   :  { %536 = vmatpush.msra.mxu0 %v277_v54 }
 0x22b   :  { %1203 = vmatmul.msk.f32.vlgmr.msrb.gmra.mxu0 %vm154_vm1, %v303_v53 }
 0x296   :  { %v251_v56 = vpop.f32.mrf.mxu3 }
 0x297   :  { %1209 = vmatmul.msk.f32.vlgmr.msra.gmra.mxu0 %vm154_vm1, %v251_v56 }
 0x298   :  { %v274_v57 = vpop.f32.mrf.mxu0 }
 0x29e   :  { %v356_v15 = vpop.f32.mrf.mxu3 }
 0x29f   :  { %1210 = vmatmul.msk.f32.gmra.mxu0 %vm154_vm1, %v274_v57  ;;  %456 = vmatpush.msra.mxu1 %v356_v15 }
 0x2a0   :  { %v385_v58 = vpop.f32.mrf.mxu0 }
 0x2a1   :  { %v414_v62 = vmul.f32 0.35355338, %v385_v58  ;;  %561 = vmatpush.msrb.mxu1 %v1214_v21 }
 0x2a3   :  { %v416_v63 = vsel %vm154_vm1, %v414_v62, -inf  ;;  %562 = vmatpush.msrb.mxu1 %v1213_v22 }
 0x2a5   :  { %563 = vmatpush.msrb.mxu1 %v1212_v23 }
 0x2a6   :  { %v359_v16 = vpop.f32.mrf.mxu3 }
 0x2a7   :  { %479 = vmatpush.msra.mxu2 %v359_v16  ;;  %564 = vmatpush.msrb.mxu1 %v1211_v24  ;;  %v1235_v16 = vld [vmem:[%s1792_s4 + $0x10] sm:$0xff] }
 0x2a8   :  { %v411_v59 = vpop.f32.mrf.mxu0 }
 0x2a9   :  { %v415_v60 = vmul.f32 0.35355338, %v411_v59  ;;  %589 = vmatpush.msrb.mxu2 %v1220_v17 }
 0x2ab   :  { %v419_v61 = vsel %vm154_vm1, %v415_v60, -inf  ;;  %590 = vmatpush.msrb.mxu2 %v1219_v18 }
 0x2ac   :  { %420 = vmax.xlane.f32.xlu2 %v419_v61 }
 0x2ad   :  { %591 = vmatpush.msrb.mxu2 %v1218_v19 }
 0x2af   :  { %592 = vmatpush.msrb.mxu2 %v1217_v20 }
 0x2b4   :  { %417 = vmax.xlane.f32.xlu2 %v416_v63 }
 0x314   :  { %v1626_v40 = vpop.f32.mrf.mxu0 }
 0x31c   :  { %v1631_v42 = vpop.f32.mrf.mxu0 }
 0x31f   :  { %v421_v3 = vpop.xlane.xlu2 %420 }
 0x320   :  { %v423_v4 = vsub.f32 %v415_v60, %v421_v3  ;;  %v1240_v3 = vld [vmem:[%s1789_s1 + $0x70] sm:$0xff] }
 0x322   :  { %v426_v5 = vmul.f32 1.442695, %v423_v4  ;;  %v1244_v4 = vld [vmem:[%s1790_s2 + $0x60] sm:$0xff] }
 0x324   :  { %1289 = vpow2.f32 %v426_v5  ;;  %v1239_v5 = vld [vmem:[%s1789_s1 + $0x68] sm:$0xff] }
 0x327   :  { %v418_v6 = vpop.xlane.xlu2 %417 }
 0x328   :  { %v422_v7 = vsub.f32 %v414_v62, %v418_v6  ;;  %v1247_v62 = vld [vmem:[%s1790_s2 + $0x78] sm:$0xff] }
 0x32a   :  { %v1290_v10 = vpop.eup %1289  ;;  %v424_v11 = vmul.f32 1.442695, %v422_v7  ;;  %v1238_v7 = vld [vmem:[%s1789_s1 + $0x60] sm:$0xff] }
 0x32b   :  { %v431_v12 = vsel %vm154_vm1, %v1290_v10, 0.0 }
 0x32c   :  { %1291 = vpow2.f32 %v424_v11  ;;  %432 = vadd.xlane.f32.xlu0 %v431_v12 }
 0x332   :  { %v1292_v13 = vpop.eup %1291 }
 0x333   :  { %v428_v14 = vsel %vm154_vm1, %v1292_v13, 0.0 }
 0x334   :  { %429 = vadd.xlane.f32.xlu1 %v428_v14 }
 0x39f   :  { %v433_v25 = vpop.xlane.xlu0 %432 }
 0x3a0   :  { %1293 = vrcp.f32 %v433_v25 }
 0x3a6   :  { %v1294_v26 = vpop.eup %1293 }
 0x3a7   :  { %v437_v27 = vmul.f32 %v1294_v26, %v1290_v10  ;;  %v430_v28 = vpop.xlane.xlu1 %429 }
 0x3a8   :  { %1295 = vrcp.f32 %v430_v28 }
 0x3a9   :  { %1205 = vmatmul.msk.f32.vlgmr.msra.gmra.mxu2 %vm154_vm1, %v437_v27 }
 0x3ae   :  { %v1296_v29 = vpop.eup %1295 }
 0x3af   :  { %v436_v30 = vmul.f32 %v1296_v29, %v1292_v13 }
 0x3b1   :  { %1204 = vmatmul.msk.f32.vlgmr.msra.gmra.mxu1 %vm154_vm1, %v436_v30  ;;  %1221 = vmatmul.msk.f32.vlgmr.msrb.gmra.mxu2 %vm70_vm0, %v1475_v8 }
 0x3b9   :  { %1222 = vmatmul.msk.f32.gmra.mxu2 %vm70_vm0, %v1484_v9  ;;  %1215 = vmatmul.msk.f32.vlgmr.msrb.gmra.mxu1 %vm70_vm0, %v1475_v8 }
 0x3c1   :  { %1216 = vmatmul.msk.f32.gmra.mxu1 %vm70_vm0, %v1484_v9 }
 0x42c   :  { %v481_v32 = vpop.f32.mrf.mxu2 }
 0x42e   :  { %v458_v33 = vpop.f32.mrf.mxu1 }
 0x42f   :  { %1207 = vmatmul.msk.f32.vlgmr.msra.gmra.mxu3 %vm154_vm1, %v458_v33 }
 0x430   :  { %828 = vmatpush.msra.mxu3 %v1247_v62  ;;  %v1050_v62 = vld [vmem:[%s1794_s6 + $0x8] sm:$0xff] }
 0x432   :  { %829 = vmatpush.msra.mxu3 %v1246_v0  ;;  %v1095_v0 = vld [vmem:[%s1796_s8 + $0x38] sm:$0xff] }
 0x434   :  { %v594_v34 = vpop.f32.mrf.mxu2  ;;  %830 = vmatpush.msra.mxu3 %v1245_v2  ;;  %v1093_v2 = vld [vmem:[%s1796_s8 + $0x28] sm:$0xff] }
 0x435   :  { %1229 = vmatpush.xpose.msk.msrb.mxu0 %vm154_vm1, %v594_v34 }
 0x436   :  { %v566_v35 = vpop.f32.mrf.mxu1  ;;  %831 = vmatpush.msra.mxu3 %v1244_v4 }
 0x437   :  { %1208 = vmatmul.msk.f32.gmra.mxu3 %vm154_vm1, %v481_v32 }
 0x438   :  { %1230 = vmatmul.msk.f32.vlgmr.msrb.gmra.mxu0 %vm154_vm1, %v566_v35  ;;  %v1253_v35 = vld [vmem:[%s1791_s3 + $0x78] sm:$0xff] }
 0x43c   :  { %v597_v36 = vpop.f32.mrf.mxu2 }
 0x43d   :  { %1231 = vmatpush.xpose.msk.msra.mxu1 %vm154_vm1, %v597_v36  ;;  %v1252_v36 = vld [vmem:[%s1791_s3 + $0x70] sm:$0xff] }
 0x43e   :  { %v569_v37 = vpop.f32.mrf.mxu1 }
 0x43f   :  { %1227 = vmatmul.msk.f32.vlgmr.msrb.gmra.mxu3 %vm70_vm0, %v1475_v8 }
 0x440   :  { %1232 = vmatmul.msk.f32.vlgmr.msra.gmra.mxu1 %vm154_vm1, %v569_v37  ;;  %v1251_v37 = vld [vmem:[%s1791_s3 + $0x68] sm:$0xff]  ;;  %1115 = vmatpush.msrb.mxu3 %v1095_v0 }
 0x441   :  { %773 = vmatpush.msrb.mxu1 %v1235_v16 }
 0x447   :  { %1228 = vmatmul.msk.f32.gmra.mxu3 %vm70_vm0, %v1484_v9 }
 0x44f   :  { %1248 = vmatmul.msk.f32.vlgmr.msra.gmra.mxu3 %vm70_vm0, %v1475_v8 }
 0x457   :  { %1249 = vmatmul.msk.f32.gmra.mxu3 %vm70_vm0, %v1484_v9 }
 0x4b2   :  { %v509_v60 = vpop.f32.mrf.mxu3 }
 0x4b3   :  { %v539_v23 = vadd.f32 %v1626_v40, %v509_v60  ;;  %v1052_v60 = vld [vmem:[%s1794_s6 + $0x18] sm:$0xff] }
 0x4b5   :  { %v651_v43 = vpop.f32.mrf.mxu0 }
 0x4b6   :  { %v680_v44 = vmul.f32 0.35355338, %v651_v43 }
 0x4b8   :  { %v682_v45 = vsel %vm154_vm1, %v680_v44, -inf }
 0x4b9   :  { %683 = vmax.xlane.f32.xlu2 %v682_v45 }
 0x4ba   :  { %v512_v61 = vpop.f32.mrf.mxu3 }
 0x4bb   :  { %v542_v26 = vadd.f32 %v1631_v42, %v512_v61  ;;  %v1051_v61 = vld [vmem:[%s1794_s6 + $0x10] sm:$0xff] }
 0x4bd   :  { %v677_v46 = vpop.f32.mrf.mxu1 }
 0x4be   :  { %v681_v47 = vmul.f32 0.35355338, %v677_v46 }
 0x4c0   :  { %v685_v48 = vsel %vm154_vm1, %v681_v47, -inf }
 0x4c1   :  { %686 = vmax.xlane.f32.xlu0 %v685_v48 }
 0x4c2   :  { %v622_v63 = vpop.f32.mrf.mxu3 }
 0x4c3   :  { %722 = vmatpush.msra.mxu2 %v622_v63  ;;  %v1049_v63 = vld [vmem:[%s1794_s6] sm:$0xff] }
 0x4c5   :  { %800 = vmatpush.msrb.mxu2 %v1241_v1  ;;  %v1094_v1 = vld [vmem:[%s1796_s8 + $0x30] sm:$0xff] }
 0x4c6   :  { %1116 = vmatpush.msrb.mxu3 %v1094_v1 }
 0x4c7   :  { %801 = vmatpush.msrb.mxu2 %v1240_v3  ;;  %v1274_v3 = vld [vmem:[%s1793_s5] ss:$0 sm:$0xff] }
 0x4c8   :  { %1117 = vmatpush.msrb.mxu3 %v1093_v2 }
 0x4c9   :  { %802 = vmatpush.msrb.mxu2 %v1239_v5  ;;  %v1092_v5 = vld [vmem:[%s1796_s8 + $0x20] sm:$0xff] }
 0x4ca   :  { %v625_v6 = vpop.f32.mrf.mxu3  ;;  %1118 = vmatpush.msrb.mxu3 %v1092_v5 }
 0x4cb   :  { %745 = vmatpush.msra.mxu0 %v625_v6  ;;  %803 = vmatpush.msrb.mxu2 %v1238_v7  ;;  %v1091_v7 = vld [vmem:[%s1796_s8 + $0x18] sm:$0xff] }
 0x4cc   :  { %1119 = vmatpush.msrb.mxu3 %v1091_v7 }
 0x4cd   :  { %856 = vmatpush.msrb.mxu0 %v1253_v35  ;;  %v1278_v35 = vld [vmem:[%s1797_s9] ss:$0 sm:$0xff]  ;;  %s1362_s9 = smov [#allocation5]  }
 0x4ce   :  { %s1155_s19 = sshll.u32 %s1362_s9, 4  ;;  %s1156_s19 = int_to_ptr.vmem [resolvable:$true] %s1155_s19 }
 0x4cf   :  { %857 = vmatpush.msrb.mxu0 %v1252_v36 }
 0x4d1   :  { %858 = vmatpush.msrb.mxu0 %v1251_v37 }
 0x4d2   :  { %v833_v17 = vpop.f32.mrf.mxu3 }
 0x4d3   :  { %1256 = vmatpush.xpose.msk.msra.mxu1 %vm154_vm1, %v833_v17  ;;  %859 = vmatpush.msrb.mxu0 %v1250_v38  ;;  %v1275_v17 = vld [vmem:[%s1798_s10] ss:$0 sm:$0xff] }
 0x4da   :  { %v836_v18 = vpop.f32.mrf.mxu3 }
 0x52c   :  { %v684_v50 = vpop.xlane.xlu2 %683 }
 0x52d   :  { %v688_v51 = vsub.f32 %v680_v44, %v684_v50 }
 0x52f   :  { %v690_v52 = vmul.f32 1.442695, %v688_v51 }
 0x531   :  { %1297 = vpow2.f32 %v690_v52 }
 0x534   :  { %v687_v53 = vpop.xlane.xlu0 %686 }
 0x535   :  { %v689_v54 = vsub.f32 %v681_v47, %v687_v53 }
 0x537   :  { %v1298_v55 = vpop.eup %1297  ;;  %v692_v56 = vmul.f32 1.442695, %v689_v54 }
 0x538   :  { %v694_v57 = vsel %vm154_vm1, %v1298_v55, 0.0 }
 0x539   :  { %1299 = vpow2.f32 %v692_v56  ;;  %695 = vadd.xlane.f32.xlu1 %v694_v57  ;;  %v1262_v57 = vld [vmem:[%s1792_s4 + $0x18] sm:$0xff] }
 0x53f   :  { %v1300_v58 = vpop.eup %1299 }
 0x540   :  { %v697_v59 = vsel %vm154_vm1, %v1300_v58, 0.0 }
 0x541   :  { %698 = vadd.xlane.f32.xlu2 %v697_v59 }
 0x5ac   :  { %v696_v10 = vpop.xlane.xlu1 %695 }
 0x5ad   :  { %1301 = vrcp.f32 %v696_v10 }
 0x5b3   :  { %v1302_v11 = vpop.eup %1301 }
 0x5b4   :  { %v702_v12 = vmul.f32 %v1302_v11, %v1298_v55  ;;  %v699_v13 = vpop.xlane.xlu2 %698  ;;  %v1032_v11 = vstv %s1028_s16  ;;  %s1265_s16 = sld [smem:[#allocation2 + $0x1]] }
 0x5b5   :  { %1303 = vrcp.f32 %v699_v13 }
 0x5b6   :  { %1233 = vmatmul.msk.f32.vlgmr.msra.gmra.mxu2 %vm154_vm1, %v702_v12 }
 0x5b7   :  { %1258 = vmatpush.xpose.msk.msra.mxu2 %vm154_vm1, %v836_v18 }
 0x5ba   :  { %v1132_v38 = vstv %s1265_s16 }
 0x5bb   :  { %v1304_v14 = vpop.eup %1303 }
 0x5bc   :  { %v703_v15 = vmul.f32 %v1304_v14, %v1300_v58 }
 0x5be   :  { %1234 = vmatmul.msk.f32.vlgmr.msra.gmra.mxu0 %vm154_vm1, %v703_v15  ;;  %1242 = vmatmul.msk.f32.vlgmr.msrb.gmra.mxu2 %vm70_vm0, %v1475_v8 }
 0x5bf   :  { %1075 = vmatpush.msrb.mxu2 %v1052_v60 }
 0x5c1   :  { %1076 = vmatpush.msrb.mxu2 %v1051_v61 }
 0x5c3   :  { %1077 = vmatpush.msrb.mxu2 %v1050_v62 }
 0x5c5   :  { %1078 = vmatpush.msrb.mxu2 %v1049_v63 }
 0x5c6   :  { %1243 = vmatmul.msk.f32.gmra.mxu2 %vm70_vm0, %v1484_v9  ;;  %1254 = vmatmul.msk.f32.vlgmr.msrb.gmra.mxu0 %vm70_vm0, %v1475_v8 }
 0x5ce   :  { %1255 = vmatmul.msk.f32.gmra.mxu0 %vm70_vm0, %v1484_v9 }
 0x639   :  { %v724_v19 = vpop.f32.mrf.mxu2 }
 0x63a   :  { %1236 = vmatmul.msk.f32.vlgmr.msrb.gmra.mxu1 %vm154_vm1, %v724_v19  ;;  %v1276_v19 = vld [vmem:[%s1799_s11] ss:$0 sm:$0xff] }
 0x63b   :  { %v747_v20 = vpop.f32.mrf.mxu0  ;;  %1012 = vmatpush.msrb.mxu1 %v1262_v57 }
 0x641   :  { %v805_v21 = vpop.f32.mrf.mxu2 }
 0x642   :  { %1237 = vmatmul.msk.f32.gmra.mxu1 %vm154_vm1, %v747_v20 }
 0x643   :  { %v861_v49 = vpop.f32.mrf.mxu0 }
 0x644   :  { %961 = vmatpush.msra.mxu0 %v861_v49 }
 0x649   :  { %v808_v22 = vpop.f32.mrf.mxu2 }
 0x64a   :  { %1257 = vmatmul.msk.f32.vlgmr.msra.gmra.mxu1 %vm154_vm1, %v805_v21  ;;  %1259 = vmatmul.msk.f32.vlgmr.msra.gmra.mxu2 %vm154_vm1, %v808_v22 }
 0x64b   :  { %v864_v50 = vpop.f32.mrf.mxu0 }
 0x64c   :  { %984 = vmatpush.msrb.mxu0 %v864_v50 }
 0x6b7   :  { %v775_v24 = vpop.f32.mrf.mxu1 }
 0x6b8   :  { %v1688_v25 = vadd.f32 %v775_v24, %v539_v23 }
 0x6bf   :  { %v778_v27 = vpop.f32.mrf.mxu1 }
 0x6c0   :  { %v1691_v28 = vadd.f32 %v778_v27, %v542_v26  ;;  %v1089_v26 = vld [vmem:[%s1796_s8 + $0x8] sm:$0xff]  ;;  %v1088_v27 = vld [vmem:[%s1796_s8] sm:$0xff] }
 0x6c7   :  { %v890_v29 = vpop.f32.mrf.mxu1 }
 0x6c8   :  { %v919_v30 = vmul.f32 0.35355338, %v890_v29 }
 0x6ca   :  { %v921_v31 = vsel %vm154_vm1, %v919_v30, -inf }
 0x6cb   :  { %922 = vmax.xlane.f32.xlu0 %v921_v31 }
 0x6cd   :  { %v916_v32 = vpop.f32.mrf.mxu2 }
 0x6ce   :  { %v920_v33 = vmul.f32 0.35355338, %v916_v32 }
 0x6d0   :  { %v924_v34 = vsel %vm154_vm1, %v920_v33, -inf }
 0x6d1   :  { %925 = vmax.xlane.f32.xlu1 %v924_v34 }
 0x73e   :  { %v923_v39 = vpop.xlane.xlu0 %922 }
 0x73f   :  { %v927_v40 = vsub.f32 %v919_v30, %v923_v39 }
 0x741   :  { %v929_v41 = vmul.f32 1.442695, %v927_v40 }
 0x743   :  { %1305 = vpow2.f32 %v929_v41 }
 0x744   :  { %v926_v42 = vpop.xlane.xlu1 %925 }
 0x745   :  { %v928_v43 = vsub.f32 %v920_v33, %v926_v42 }
 0x747   :  { %v931_v44 = vmul.f32 1.442695, %v928_v43  ;;  %v1279_v43 = vld [vmem:[%s1800_s12] ss:$0 sm:$0xff]  ;;  %s1363_s12 = smov 128  }
 0x749   :  { %v1306_v45 = vpop.eup %1305  ;;  %1307 = vpow2.f32 %v931_v44 }
 0x74a   :  { %v933_v46 = vsel %vm154_vm1, %v1306_v45, 0.0 }
 0x74b   :  { %934 = vadd.xlane.f32.xlu2 %v933_v46 }
 0x74f   :  { %v1308_v47 = vpop.eup %1307 }
 0x750   :  { %v936_v48 = vsel %vm154_vm1, %v1308_v47, 0.0 }
 0x751   :  { %937 = vadd.xlane.f32.xlu0 %v936_v48 }
 0x7be   :  { %v935_v51 = vpop.xlane.xlu2 %934 }
 0x7bf   :  { %1309 = vrcp.f32 %v935_v51 }
 0x7c4   :  { %v938_v52 = vpop.xlane.xlu0 %937 }
 0x7c5   :  { %v1310_v53 = vpop.eup %1309  ;;  %1311 = vrcp.f32 %v938_v52 }
 0x7c6   :  { %v941_v54 = vmul.f32 %v1310_v53, %v1306_v45  ;;  %v1280_v45 = vld [vmem:[%s1801_s13] ss:$0 sm:$0xff]  ;;  %s1364_s13 = smov 8  }
 0x7c8   :  { %1260 = vmatmul.msk.f32.vlgmr.msra.gmra.mxu0 %vm154_vm1, %v941_v54 }
 0x7cb   :  { %v1312_v55 = vpop.eup %1311 }
 0x7cc   :  { %v942_v56 = vmul.f32 %v1312_v55, %v1308_v47 }
 0x7d0   :  { %1261 = vmatmul.msk.f32.vlgmr.msrb.gmra.mxu0 %vm154_vm1, %v942_v56 }
 0x845   :  { %v963_v58 = vpop.f32.mrf.mxu0 }
 0x846   :  { %1263 = vmatmul.msk.f32.vlgmr.msrb.gmra.mxu1 %vm154_vm1, %v963_v58 }
 0x84d   :  { %v986_v59 = vpop.f32.mrf.mxu0 }
 0x84e   :  { %1264 = vmatmul.msk.f32.gmra.mxu1 %vm154_vm1, %v986_v59 }
 0x8c3   :  { %v1014_v4 = vpop.f32.mrf.mxu1 }
 0x8c4   :  { %v1020_v6 = vadd.f32 %v1014_v4, %v1688_v25 }
 0x8c6   :  { %v1026_v10 = vadd.f32 %v1274_v3, %v1020_v6 }
 0x8c8   :  { %v1030_v12 = vadd.f32 %v1026_v10, %v1475_v8 }
 0x8ca   :  { %v1033_v13 = vmul.f32 %v1032_v11, %v1030_v12 }
 0x8cb   :  { %v1017_v14 = vpop.f32.mrf.mxu1 }
 0x8cc   :  { %1313 = vtanh.f32 %v1033_v13  ;;  %v1021_v15 = vadd.f32 %v1017_v14, %v1691_v28  ;;  %v1277_v28 = vld [vmem:[%s1795_s7] ss:$0 sm:$0xff] }
 0x8ce   :  { %v1027_v16 = vadd.f32 %v1274_v3, %v1021_v15 }
 0x8d0   :  { %v1031_v18 = vadd.f32 %v1027_v16, %v1484_v9  ;;  %v1090_v9 = vld [vmem:[%s1796_s8 + $0x10] sm:$0xff] }
 0x8d1   :  { %1120 = vmatpush.msrb.mxu3 %v1090_v9 }
 0x8d2   :  { %v1314_v20 = vpop.eup %1313  ;;  %v1034_v21 = vmul.f32 %v1032_v11, %v1031_v18 }
 0x8d3   :  { %v1041_v8 = vmul.f32 %v1314_v20, %v1275_v17  ;;  %1121 = vmatpush.msrb.mxu3 %v1089_v26 }
 0x8d4   :  { %1315 = vtanh.f32 %v1034_v21 }
 0x8d5   :  { %v1047_v22 = vadd.f32 %v1276_v19, %v1041_v8  ;;  %1122 = vmatpush.msrb.mxu3 %v1088_v27 }
 0x8d7   :  { %1266 = vmatmul.msk.f32.vlgmr.msrb.gmra.mxu2 %vm70_vm0, %v1047_v22 }
 0x8da   :  { %v1316_v23 = vpop.eup %1315 }
 0x8db   :  { %v1042_v24 = vmul.f32 %v1316_v23, %v1275_v17 }
 0x8dd   :  { %v1048_v25 = vadd.f32 %v1276_v19, %v1042_v24 }
 0x8df   :  { %1267 = vmatmul.msk.f32.gmra.mxu2 %vm70_vm0, %v1048_v25 }
 0x95a   :  { %v1080_v29 = vpop.f32.mrf.mxu2 }
 0x95b   :  { %v1081_v30 = vadd.f32 %v1277_v28, %v1080_v29 }
 0x95d   :  { %v1086_v31 = vmax.f32 %v1081_v30, 0.0 }
 0x95f   :  { %1268 = vmatmul.msk.f32.vlgmr.msrb.gmra.mxu3 %vm1100_vm2, %v1086_v31 }
 0x962   :  { %v1083_v32 = vpop.f32.mrf.mxu2 }
 0x963   :  { %v1084_v33 = vadd.f32 %v1277_v28, %v1083_v32 }
 0x965   :  { %v1087_v34 = vmax.f32 %v1084_v33, 0.0 }
 0x967   :  { %1269 = vmatmul.msk.f32.gmra.mxu3 %vm1100_vm2, %v1087_v34 }
 0x9e2   :  { %v1124_v36 = vpop.f32.mrf.mxu3 }
 0x9e3   :  { %v1125_v37 = vadd.f32 %v1278_v35, %v1124_v36 }
 0x9e5   :  { %v1130_v39 = vadd.f32 %v1125_v37, %v1047_v22 }
 0x9e7   :  { %v1133_v40 = vmul.f32 %v1132_v38, %v1130_v39 }
 0x9e9   :  { %1317 = vtanh.f32 %v1133_v40 }
 0x9ea   :  { %v1127_v41 = vpop.f32.mrf.mxu3 }
 0x9eb   :  { %v1128_v42 = vadd.f32 %v1278_v35, %v1127_v41 }
 0x9ed   :  { %v1131_v44 = vadd.f32 %v1128_v42, %v1048_v25 }
 0x9ef   :  { %v1318_v46 = vpop.eup %1317  ;;  %v1134_v47 = vmul.f32 %v1132_v38, %v1131_v44 }
 0x9f0   :  { %v1141_v48 = vmul.f32 %v1318_v46, %v1279_v43 }
 0x9f1   :  { %1319 = vtanh.f32 %v1134_v47 }
 0x9f2   :  { %v1147_v49 = vadd.f32 %v1280_v45, %v1141_v48 }
 0x9f4   :  { %1149 = vst.msk [vmem:[#allocation5] sm:$0xff] %vm70_vm0, %v1147_v49 }
 0x9f7   :  { %v1320_v50 = vpop.eup %1319 }
 0x9f8   :  { %v1142_v51 = vmul.f32 %v1320_v50, %v1279_v43 }
 0x9fa   :  { %v1148_v52 = vadd.f32 %v1280_v45, %v1142_v51 }
 0x9fc   :  { %1150 = vst.msk [vmem:[#allocation5 + $0x8] sm:$0xff] %vm70_vm0, %v1148_v52 }
 0x9fd   :  { %1163 = dma.vmem_to_hbm [thread:$0]  %s1156_s19, 256, %s1158_s22, [#allocation3], %s1363_s12, %s1363_s12, %s1364_s13  }
 0x9fe   :  { %1359 = dma.done.wait [#allocation3], 256  }
 0x9ff   :  { %1360 = vsyncadd [#allocation3], 4294967040 }
 0xa00   :  { %1168 = vsyncpa [#allocation3], 1 }
 0xa01   :  { %1169 = vsyncpa [#allocation4], 1 }

</bundles_post_ra>
